<compile_context>
chip_gen: v6e
topology: v6e:2x2x1
jax: 0.10.0
libtpu: 0.0.40
codegen_flags: <defaults>
</compile_context>

<pallas_src>
import functools

import jax
import jax.numpy as jnp
from jax.experimental import pallas as pl
from jax.experimental.pallas import tpu as pltpu

# -------------------- model hyper-params (small, synthetic) --------------------
VOCAB = 128          # lane-friendly vocab size
DIM = 32             # embedding / hidden dim
MAX_SEQ_LEN = 8      # net.max_seq_len
IGNORE_INDEX = -100
PAD_VALUE = 0

_SUB, _LANE = 8, 128  # f32 vreg tile (sublane x lane)


def _round_up(x, m):
    return ((x + m - 1) // m) * m


# -------------------- Pallas kernel: fused gather + logits + CE partial --------------------
def _ce_kernel(ids_ref, tgt_ref, emb_ref, w_ref, sums_ref, *, ignore_index):
    # ids_ref:  (TN, 1)      i32   input token ids (pre-clipped to [0, V-1])
    # tgt_ref:  (TN, 1)      i32   target ids (ignore_index marks invalid/pad)
    # emb_ref:  (V, D_AUG)   bf16  embedding table; column D holds all-ones
    # w_ref:    (D_AUG, V)   bf16  projection; row D holds the to-logits bias
    # sums_ref: (1, 8, 128)  f32   lane-dense broadcast of this tile's sum(nll)
    ids = ids_ref[...]                                           # (TN, 1) i32
    tgt = tgt_ref[...]                                           # (TN, 1) i32
    emb = emb_ref[...]                                           # (V, D_AUG) bf16
    w = w_ref[...]                                               # (D_AUG, V) bf16
    tn = ids.shape[0]
    vocab = emb.shape[0]

    # Single (TN, V) iota, reused for the gather one-hot and the target select
    # (JAX does not CSE broadcast_in_dim).
    iota_v = jax.lax.broadcasted_iota(jnp.int32, (tn, vocab), 1)

    # --- embedding row gather on the MXU: exact 0/1 one-hot in bf16 ---
    onehot = (iota_v == ids).astype(jnp.bfloat16)                # (TN, V)
    x = jnp.dot(onehot, emb, preferred_element_type=jnp.float32) # (TN, D_AUG)
    # x rows are exactly bf16 embedding rows -> casting back to bf16 is lossless.
    logits = jnp.dot(x.astype(jnp.bfloat16), w,
                     preferred_element_type=jnp.float32)         # (TN, V), bias folded in

    # --- numerically stable logsumexp (keepdims everywhere: one layout) ---
    m = jnp.max(logits, axis=-1, keepdims=True)                                  # (TN, 1)
    # TODO(synk): if profiling shows the 2-XLU slot saturating on v6e/v7x, move
    # this sum and the target-select sum to the MXU via `@ jnp.ones((V, 1))`.
    lse = m + jnp.log(jnp.sum(jnp.exp(logits - m), axis=-1, keepdims=True))      # (TN, 1)

    # --- target logit via masked select (reuses iota_v) ---
    tgt_logit = jnp.sum(jnp.where(iota_v == tgt, logits, 0.0),
                        axis=-1, keepdims=True)                                  # (TN, 1)

    # --- ignore-index masking, per-tile partial ---
    valid = tgt != ignore_index
    nll = jnp.where(valid, lse - tgt_logit, 0.0)                                 # (TN, 1)

    # Lane-dense (8, 128) broadcast store (unmasked vst); reduced in JAX.
    sums_ref[...] = jnp.zeros_like(sums_ref) + jnp.sum(nll)


def fused_ce_sum(ids, targets, emb_aug, w_aug, *,
                 ignore_index=IGNORE_INDEX, block_n=2048):
    """Sum over non-ignored tokens of (logsumexp(logits) - logits[target]).

    ids/targets: [N, 1] i32;  emb_aug: [V, D_AUG] bf16;  w_aug: [D_AUG, V] bf16.
    """
    n = ids.shape[0]
    vocab, d_aug = emb_aug.shape

    # Tile the token axis: multiple of 8, clamped to the data, and prefer at
    # least 2 tiles so the "parallel" grid axis can use both v7x TensorCores.
    block_n = max(_SUB, min(block_n, _round_up(n, _SUB)))
    block_n = _round_up(block_n, _SUB)
    if pl.cdiv(n, block_n) < 2 and n > _SUB:
        block_n = _round_up(pl.cdiv(n, 2), _SUB)
    n_pad = _round_up(n, block_n)
    if n_pad != n:
        ids = jnp.pad(ids, ((0, n_pad - n), (0, 0)))                   # pad with token 0
        targets = jnp.pad(targets, ((0, n_pad - n), (0, 0)),
                          constant_values=ignore_index)                # excluded from loss
    num_tiles = n_pad // block_n

    kernel = functools.partial(_ce_kernel, ignore_index=ignore_index)
    bytes_accessed = ((ids.size + targets.size) * 4
                      + (emb_aug.size + w_aug.size) * 2
                      + num_tiles * _SUB * _LANE * 4)

    sums = pl.pallas_call(
        kernel,
        out_shape=jax.ShapeDtypeStruct((num_tiles, _SUB, _LANE), jnp.float32),
        grid=(num_tiles,),
        in_specs=[
            # NOTE: (block_n, 1) i32 blocks lane-pad to block_n*512 B in VMEM
            # (x2 arrays x2 pipeline buffers); budgeted via vmem_limit_bytes.
            pl.BlockSpec((block_n, 1), lambda i: (i, 0)),        # input token ids
            pl.BlockSpec((block_n, 1), lambda i: (i, 0)),        # target ids
            # Grid-invariant weights: whole-array VMEM residents, single-buffered,
            # loaded once (no per-step re-fetch, no double-buffer VMEM cost).
            pl.BlockSpec(memory_space=pltpu.MemorySpace.VMEM),   # embed (+ ones col)
            pl.BlockSpec(memory_space=pltpu.MemorySpace.VMEM),   # projection (+ bias row)
        ],
        out_specs=pl.BlockSpec((1, _SUB, _LANE), lambda i: (i, 0, 0)),
        compiler_params=pltpu.CompilerParams(
            dimension_semantics=("parallel",),     # independent tiles -> TC-shardable
            vmem_limit_bytes=64 * 1024 * 1024,     # explicit budget for large block_n
        ),
        cost_estimate=pl.CostEstimate(
            flops=4 * n_pad * vocab * d_aug,       # two MXU matmuls per token row
            transcendentals=n_pad * (vocab + 1),   # exp + log
            bytes_accessed=bytes_accessed,
        ),
    )(ids, targets, emb_aug, w_aug)

    return jnp.sum(sums[:, 0, 0])


# -------------------- synthetic "net" + AutoregressiveWrapper.forward --------------------
def init_params(key):
    k_emb, k_w, k_b = jax.random.split(key, 3)
    embed = jax.random.normal(k_emb, (VOCAB, DIM), jnp.float32) * 0.02
    w = jax.random.normal(k_w, (DIM, VOCAB), jnp.float32) * 0.02
    b = jax.random.normal(k_b, (1, VOCAB), jnp.float32) * 0.02
    return {"embed": embed, "w": w, "b": b}


def autoregressive_wrapper_forward(params, x, *, block_n=2048):
    """x: [B, T+1] int32 token ids.  Returns scalar cross-entropy loss."""
    xi = x[:, :-1]                                   # [B, T]
    xo = x[:, 1:]                                    # [B, T]
    b_sz, t = xi.shape
    n = b_sz * t

    embed, w, b = params["embed"], params["w"], params["b"]
    d = embed.shape[1]
    # Fold the to-logits bias into the projection exactly: append a "ones"
    # column to the embedding and the bias as an extra projection row; zero-pad
    # the augmented dim to a bf16-friendly multiple of 16 (sublane packing).
    d_aug = _round_up(d + 1, 16)
    emb_aug = jnp.zeros((VOCAB, d_aug), jnp.float32)
    emb_aug = emb_aug.at[:, :d].set(embed).at[:, d].set(1.0)
    w_aug = jnp.zeros((d_aug, VOCAB), jnp.float32)
    w_aug = w_aug.at[:d, :].set(w).at[d, :].set(b[0])
    # bf16 MXU operands (kernel accumulates in f32).
    emb_aug = emb_aug.astype(jnp.bfloat16)
    w_aug = w_aug.astype(jnp.bfloat16)

    ids = jnp.clip(xi, 0, VOCAB - 1).reshape(n, 1).astype(jnp.int32)
    targets = xo.reshape(n, 1).astype(jnp.int32)

    total_nll = fused_ce_sum(ids, targets, emb_aug, w_aug,
                             ignore_index=IGNORE_INDEX, block_n=block_n)
    # Valid-token count is a trivial JAX-side reduce (kernel output halved).
    count = jnp.sum((xo != IGNORE_INDEX).astype(jnp.float32))
    # NOTE: divides by zero (NaN) if every target is ignore_index — identical
    # to F.cross_entropy mean semantics.
    return total_nll / count


# -------------------- pure-JAX reference for validation --------------------
def reference_forward(params, x):
    xi = x[:, :-1]
    xo = x[:, 1:]
    x_emb = params["embed"][jnp.clip(xi, 0, VOCAB - 1)].astype(jnp.float32)
    logits = jnp.einsum("btd,dv->btv", x_emb, params["w"]) + params["b"][0]
    logp = jax.nn.log_softmax(logits, axis=-1)
    valid = xo != IGNORE_INDEX
    safe_tgt = jnp.where(valid, xo, 0)
    nll = -jnp.take_along_axis(logp, safe_tgt[..., None], axis=-1)[..., 0]
    nll = jnp.where(valid, nll, 0.0)
    return jnp.sum(nll) / jnp.sum(valid.astype(jnp.float32))


if __name__ == "__main__":
    key = jax.random.PRNGKey(0)
    k_param, k_tok = jax.random.split(key)
    params = init_params(k_param)

    B = 2
    T_PLUS_1 = MAX_SEQ_LEN + 1  # wrapper consumes x[:, :-1] of length max_seq_len
    x = jax.random.randint(k_tok, (B, T_PLUS_1), 0, VOCAB, dtype=jnp.int32)
    # exercise the ignore_index path on a couple of positions
    x = x.at[0, 3].set(IGNORE_INDEX)
    x = x.at[1, 7].set(IGNORE_INDEX)

    loss = jax.block_until_ready(autoregressive_wrapper_forward(params, x))
    ref = jax.block_until_ready(reference_forward(params, x))
    # bf16 weight tables on the MXU: compare against the f32 reference with a
    # tolerance covering the ~2^-9 table-rounding error.
    assert jnp.allclose(loss, ref, rtol=2e-3, atol=2e-3), (loss, ref)

    print("KERNEL_OK")
</pallas_src>

<mosaic_0001>
module attributes {stable_mosaic.version = 11 : i64} {
  func.func @_ce_kernel(%arg0: i32, %arg1: memref<8x1xi32, #tpu.memory_space<vmem>>, %arg2: memref<8x1xi32, #tpu.memory_space<vmem>>, %arg3: memref<128x48xbf16, #tpu.memory_space<vmem>>, %arg4: memref<48x128xbf16, #tpu.memory_space<vmem>>, %arg5: memref<1x8x128xf32, #tpu.memory_space<vmem>>) attributes {dimension_semantics = [#tpu.dimension_semantics<parallel>], iteration_bounds = array<i64: 2>, scalar_prefetch = 0 : i64, scratch_operands = 0 : i64, tpu.core_type = #tpu.core_type<tc>, window_params = [{transform_indices = @transform_0, window_bounds = array<i64: 8, 1>}, {transform_indices = @transform_1, window_bounds = array<i64: 8, 1>}, {pipeline_mode = #tpu.pipeline_mode<synchronous>, transform_indices = @transform_2, window_bounds = array<i64: 128, 48>}, {pipeline_mode = #tpu.pipeline_mode<synchronous>, transform_indices = @transform_3, window_bounds = array<i64: 48, 128>}, {transform_indices = @transform_4, window_bounds = array<i64: 1, 8, 128>}]} {
    %c0 = arith.constant 0 : index
    %c0_0 = arith.constant 0 : index
    %0 = vector.load %arg1[%c0, %c0_0] : memref<8x1xi32, #tpu.memory_space<vmem>>, vector<8x1xi32>
    %c0_1 = arith.constant 0 : index
    %c0_2 = arith.constant 0 : index
    %1 = vector.load %arg2[%c0_1, %c0_2] : memref<8x1xi32, #tpu.memory_space<vmem>>, vector<8x1xi32>
    %c0_3 = arith.constant 0 : index
    %c0_4 = arith.constant 0 : index
    %2 = vector.load %arg3[%c0_3, %c0_4] : memref<128x48xbf16, #tpu.memory_space<vmem>>, vector<128x48xbf16>
    %c0_5 = arith.constant 0 : index
    %c0_6 = arith.constant 0 : index
    %3 = vector.load %arg4[%c0_5, %c0_6] : memref<48x128xbf16, #tpu.memory_space<vmem>>, vector<48x128xbf16>
    %4 = tpu.iota {dimensions = array<i32: 1>} : vector<8x128xi32>
    %5 = vector.broadcast %0 : vector<8x1xi32> to vector<8x128xi32>
    %6 = arith.cmpi eq, %4, %5 : vector<8x128xi32>
    %7 = arith.extui %6 : vector<8x128xi1> to vector<8x128xi32>
    %8 = arith.sitofp %7 : vector<8x128xi32> to vector<8x128xf32>
    %9 = arith.truncf %8 : vector<8x128xf32> to vector<8x128xbf16>
    %cst = arith.constant dense<0.000000e+00> : vector<8x48xf32>
    %10 = tpu.matmul %9, %2, %cst {dimension_numbers = #tpu.dot_dimension_numbers<[1], [0], [0], [1], [0, 0, 1, 1], [], []>} : vector<8x128xbf16>, vector<128x48xbf16>, vector<8x48xf32> -> vector<8x48xf32>
    %11 = arith.truncf %10 : vector<8x48xf32> to vector<8x48xbf16>
    %cst_7 = arith.constant dense<0.000000e+00> : vector<8x128xf32>
    %12 = tpu.matmul %11, %3, %cst_7 {dimension_numbers = #tpu.dot_dimension_numbers<[1], [0], [0], [1], [0, 0, 1, 1], [], []>} : vector<8x48xbf16>, vector<48x128xbf16>, vector<8x128xf32> -> vector<8x128xf32>
    %cst_8 = arith.constant dense<0xFF800000> : vector<8xf32>
    %13 = vector.multi_reduction <maximumf>, %12, %cst_8 [1] : vector<8x128xf32> to vector<8xf32>
    %14 = vector.shape_cast %13 : vector<8xf32> to vector<8x1xf32>
    %15 = vector.broadcast %14 : vector<8x1xf32> to vector<8x128xf32>
    %16 = arith.subf %12, %15 : vector<8x128xf32>
    %17 = math.exp %16 : vector<8x128xf32>
    %cst_9 = arith.constant dense<0.000000e+00> : vector<8xf32>
    %18 = vector.multi_reduction <add>, %17, %cst_9 [1] : vector<8x128xf32> to vector<8xf32>
    %19 = vector.shape_cast %18 : vector<8xf32> to vector<8x1xf32>
    %20 = math.log %19 : vector<8x1xf32>
    %21 = arith.addf %14, %20 : vector<8x1xf32>
    %22 = vector.broadcast %1 : vector<8x1xi32> to vector<8x128xi32>
    %23 = arith.cmpi eq, %4, %22 : vector<8x128xi32>
    %cst_10 = arith.constant 0.000000e+00 : f32
    %24 = vector.broadcast %cst_10 : f32 to vector<8x128xf32>
    %25 = arith.select %23, %12, %24 : vector<8x128xi1>, vector<8x128xf32>
    %cst_11 = arith.constant dense<0.000000e+00> : vector<8xf32>
    %26 = vector.multi_reduction <add>, %25, %cst_11 [1] : vector<8x128xf32> to vector<8xf32>
    %27 = vector.shape_cast %26 : vector<8xf32> to vector<8x1xf32>
    %c-100_i32 = arith.constant -100 : i32
    %28 = vector.broadcast %c-100_i32 : i32 to vector<8x1xi32>
    %29 = arith.cmpi ne, %1, %28 : vector<8x1xi32>
    %30 = arith.subf %21, %27 : vector<8x1xf32>
    %cst_12 = arith.constant 0.000000e+00 : f32
    %31 = vector.broadcast %cst_12 : f32 to vector<8x1xf32>
    %32 = arith.select %29, %30, %31 : vector<8x1xi1>, vector<8x1xf32>
    %cst_13 = arith.constant 0.000000e+00 : f32
    %33 = vector.broadcast %cst_13 : f32 to vector<1x8x128xf32>
    %34 = vector.shape_cast %32 : vector<8x1xf32> to vector<1x8x1xf32>
    %cst_14 = arith.constant dense<0.000000e+00> : vector<1xf32>
    %35 = vector.multi_reduction <add>, %34, %cst_14 [1, 2] : vector<1x8x1xf32> to vector<1xf32>
    %36 = vector.shape_cast %35 : vector<1xf32> to vector<1x1x1xf32>
    %37 = vector.extract %36[0, 0, 0] : f32 from vector<1x1x1xf32>
    %38 = vector.broadcast %37 : f32 to vector<1x8x128xf32>
    %39 = arith.addf %33, %38 : vector<1x8x128xf32>
    %c0_15 = arith.constant 0 : index
    %c0_16 = arith.constant 0 : index
    %c0_17 = arith.constant 0 : index
    %40 = vector.load %arg5[%c0_15, %c0_16, %c0_17] : memref<1x8x128xf32, #tpu.memory_space<vmem>>, vector<1x8x128xf32>
    tpu.vector_store %arg5[%c0_15, %c0_16, %c0_17], %39 {strides = array<i32>} : memref<1x8x128xf32, #tpu.memory_space<vmem>>, vector<1x8x128xf32>,
    return
  }
  func.func @transform_0(%arg0: i32) -> (i32, i32) {
    %c0_i32 = arith.constant 0 : i32
    %c0_i32_0 = arith.constant 0 : i32
    return %arg0, %c0_i32 : i32, i32
  }
  func.func @transform_1(%arg0: i32) -> (i32, i32) {
    %c0_i32 = arith.constant 0 : i32
    %c0_i32_0 = arith.constant 0 : i32
    return %arg0, %c0_i32 : i32, i32
  }
  func.func @transform_2(%arg0: i32) -> (i32, i32) {
    %c0_i32 = arith.constant 0 : i32
    %c0_i32_0 = arith.constant 0 : i32
    %c0_i32_1 = arith.constant 0 : i32
    return %c0_i32, %c0_i32_0 : i32, i32
  }
  func.func @transform_3(%arg0: i32) -> (i32, i32) {
    %c0_i32 = arith.constant 0 : i32
    %c0_i32_0 = arith.constant 0 : i32
    %c0_i32_1 = arith.constant 0 : i32
    return %c0_i32, %c0_i32_0 : i32, i32
  }
  func.func @transform_4(%arg0: i32) -> (i32, i32, i32) {
    %c0_i32 = arith.constant 0 : i32
    %c0_i32_0 = arith.constant 0 : i32
    %c0_i32_1 = arith.constant 0 : i32
    return %arg0, %c0_i32, %c0_i32_0 : i32, i32, i32
  }
}

</mosaic_0001>

<bundles_post_ra>
// kernel: tpu_custom_call.1
= control target key start
LH: loop header
LB: loop body
LE: loop exit
PB: predicated region body
PF: predicated region fallthrough
CT: control target
= control target key end

     0   :  { %9 = vsyncpa [#allocation3], 0  ;;  %s873_s0 = inlined_call_operand.vmem [shape: s32[16,1], index: 0, kind: input, shape index: {}]   ;;  %s874_s1 = inlined_call_operand.vmem [shape: s32[16,1], index: 1, kind: input, shape index: {}]   ;;  %s875_s2 = inlined_call_operand.vmem [shape: bf16[128,48], index: 2, kind: input, shape index: {}]   ;;  %s876_s3 = inlined_call_operand.vmem [shape: bf16[48,128], index: 3, kind: input, shape index: {}]   ;;  %s877_s4 = inlined_call_operand.hbm [shape: f32[2,8,128], index: 4, kind: output, shape index: {}]  }
   0x1   :  { %11 = vsyncpa [#allocation3 + $0x1], 0  ;;  %s737_s15 = smov 0   ;;  %s739_s16 = smov 0  }
   0x2   :  { %s741_s17 = smov 0   ;;  %s743_s18 = smov 0  }
   0x3 LB: > { %s758_s19 = sadd.s32 4294967295, %s705_s18   ;;  %s514_s20 = sadd.s32 4294967294, %s705_s18   ;;  %s705_s18 = sphi %s743_s18, %s883_s18   ;;  %s701_s17 = sphi %s741_s17, %s882_s17   ;;  %s697_s16 = sphi %s739_s16, %s881_s16   ;;  %s693_s15 = sphi %s737_s15, %s880_s15  }
   0x4   : > { %s762_s21 = sadd.s32 1, %s705_s18   ;;  %s118_s22 = sadd.s32 1, %s701_s17 }
   0x5   : > { %s115_s23 = ssub.s32 %s705_s18, %s762_s21  ;;  %p128_p0 = scmp.ne.s32.totalorder %s701_s17, %s697_s16 }
   0x6   : > { %p116_p1 = scmp.eq.s32.totalorder %s115_s23, 0  ;;  %p129_p2 = scmp.eq.s32.totalorder %s758_s19, 1 }
   0x7   : > { %p134_p3 = scmp.ne.s32.totalorder %s697_s16, %s693_s15  ;;  %p135_p4 = scmp.eq.s32.totalorder %s514_s20, 1 }
   0x8   : > { %s773_s24 = scalar_select %p116_p1, %s701_s17, %s118_s22  }
   0x9   : > { %p775_p5 = por %p129_p2, %p128_p0  ;;  %p779_p6 = por %p135_p4, %p134_p3 }
   0xa   : > { %p517_p7 = scmp.ge.s32.totalorder %s705_s18, 1  ;;  %p173_p8 = scmp.lt.s32.totalorder %s705_s18, 3 }
   0xc   : > { %p174_p9 = pnand %p517_p7, %p173_p8 }
   0xd   : > { %p202_p10 = scmp.lt.s32.totalorder (!%p174_p9), %s758_s19, 1  ;;  %s537_s27 = sshll.u32 (!%p174_p9), %s758_s19, 7 }
   0xe   : > { %177 = sbr.rel (%p174_p9) target bundleno = 1068 (0x42c), region = 36  ;;  %s441_s7 = scalar_lea.hbm (!%p174_p9), %s877_s4, %s537_s27 }
   0xf   : > { %s711_s10 = smov (!%p174_p9), [#allocation2]  }
  0x13   : > { %v630_v0 = vld [vmem:[%s875_s2 + $0x38] sm:$0xff]   ;;  %v707_v1 = vmov 0   ;;  %v708_v2 = vmov 0.0   ;;  %s790_s29 = scalar_select %p202_p10, %s758_s19, 1  ;;  %v631_v3 = vld [vmem:[%s875_s2 + $0x30] sm:$0xff]   ;;  %v632_v5 = vld [vmem:[%s875_s2 + $0x28] sm:$0xff]   ;;  %v235_v13 = vlaneseq }
  0x14   : > { %628 = vset.pattern.permute.xlu0 %v707_v1  ;;  %553 = vmatprep.subr.bf16.mxu0 %v708_v2  ;;  %vm709_vm0 = vmmov 0   ;;  %v638_v6 = vld [vmem:[%s876_s3 + $0x10] sm:$0xff]   ;;  %v633_v7 = vld [vmem:[%s875_s2 + $0x20] sm:$0xff]   ;;  %v639_v8 = vld [vmem:[%s876_s3 + $0x8] sm:$0xff]   ;;  %v710_v16 = vmov 1.0|1.0  }
  0x15   : > { %554 = vmatpush3.bf16.msra.mxu0 %v630_v0  ;;  %573 = vmatprep.subr.bf16.mxu1 %v708_v2  ;;  %s519_s6 = sshll.u32 %s790_s29, 3  ;;  %v634_v9 = vld [vmem:[%s875_s2 + $0x18] sm:$0xff]   ;;  %v635_v10 = vld [vmem:[%s875_s2 + $0x10] sm:$0xff]   ;;  %v636_v11 = vld [vmem:[%s875_s2 + $0x8] sm:$0xff]   ;;  %v236_v14 = vand.u32 127, %v235_v13  ;;  %vm351_vm3 = vcmask 392192  }
  0x16   : > { %555 = vmatprep.subr.bf16.mxu0 %v708_v2  ;;  %629 = vset.pattern.permute.xlu1 %v707_v1  ;;  %s205_s9 = scalar_lea.vmem %s873_s0, %s519_s6  ;;  %v637_v12 = vld [vmem:[%s875_s2] sm:$0xff]   ;;  %s209_s20 = scalar_lea.vmem %s874_s1, %s519_s6  ;;  %vm415_vm6 = vcmask 7168  }
  0x17   : > { %v211_v4 = vld [vmem:[%s205_s9] sm:$0xff]  ;;  %569 = vmatprep.mubr.msk.bf16.mxu0 %vm709_vm0, %v708_v2  ;;  %579 = vmatprep.mubr.msk.bf16.mxu1 %vm709_vm0, %v708_v2  ;;  %s199_s29 = sand.u32 1, %s697_s16   ;;  %s649_s19 = sshll.u32 %s711_s10, 4  ;;  %s650_s19 = int_to_ptr.vmem [resolvable:$false] %s649_s19 }
  0x18   : > { %238 = vperm.xlu0 %628, %v211_v4   ;;  %574 = vmatpush3.bf16.msra.mxu1 %v638_v6  ;;  %v640_v17 = vld [vmem:[%s876_s3] sm:$0xff]   ;;  %s518_s6 = sshll.u32 %s199_s29, 3  ;;  %s430_s8 = scalar_lea.sflag [#allocation3], %s199_s29 }
  0x19   : > { %556 = vmatpush3.bf16.msra.mxu0 %v631_v3  ;;  %575 = vmatprep.subr.bf16.mxu1 %v708_v2  ;;  %v212_v18 = vld [vmem:[%s209_s20] sm:$0xff]  ;;  %s201_s22 = scalar_lea.vmem [#allocation2], %s518_s6  ;;  %s651_s11 = scalar_lea.vmem %s650_s19, 256 }
  0x1a   : > { %557 = vmatprep.subr.bf16.mxu0 %v708_v2  ;;  %406 = vperm.xlu1 %629, %v212_v18   ;;  %vm412_vm5 = vcmp.ne.s32.totalorder %v212_v18, 4294967196  ;;  %s443_s23 = sshll.u32 %s201_s22, 4  ;;  %s835_s23 = int_to_ptr.vmem [resolvable:$true] %s443_s23 }
  0x1b   : > { %s645_s9 = scalar_lea.vmem %s835_s23, 128  ;;  %p652_p0 = scmp.lt.s32.totalorder %s835_s23, %s650_s19 }
  0x1c   : > { %576 = vmatpush3.bf16.msra.mxu1 %v639_v8  ;;  %p646_p11 = scmp.ne.s32.totalorder %s835_s23, %s645_s9  ;;  %p653_p1 = scmp.lt.s32.totalorder %s651_s11, %s645_s9 }
  0x1d   : > { %558 = vmatpush3.bf16.msra.mxu0 %v632_v5  ;;  %577 = vmatprep.subr.bf16.mxu1 %v708_v2 }
  0x1e   : > { %559 = vmatprep.subr.bf16.mxu0 %v708_v2  ;;  %p647_p12 = pnand %p646_p11, %p775_p5  ;;  %p654_p2 = por %p653_p1, %p652_p0 }
  0x20   : > { %578 = vmatpush3.bf16.msra.mxu1 %v640_v17  ;;  %p648_p13 = pneg %p647_p12 }
  0x21   : > { %560 = vmatpush3.bf16.msra.mxu0 %v633_v7 }
  0x22   : > { %561 = vmatprep.subr.bf16.mxu0 %v708_v2  ;;  %p655_p3 = pnand %p654_p2, %p648_p13 }
  0x25   : > { %562 = vmatpush3.bf16.msra.mxu0 %v634_v9 }
  0x26   : > { %563 = vmatprep.subr.bf16.mxu0 %v708_v2 }
  0x29   : > { %564 = vmatpush3.bf16.msra.mxu0 %v635_v10 }
  0x2a   : > { %565 = vmatprep.subr.bf16.mxu0 %v708_v2 }
  0x2d   : > { %566 = vmatpush3.bf16.msra.mxu0 %v636_v11 }
  0x2e   : > { %567 = vmatprep.subr.bf16.mxu0 %v708_v2 }
  0x31   : > { %568 = vmatpush3.bf16.msra.mxu0 %v637_v12 }
  0x93   : > { %v239_v15 = vpop.permute.xlu0 %238 }
  0x94   : > { %vm240_vm1 = vcmp.eq.s32.totalorder %v236_v14, %v239_v15 }
  0x95   : > { %vm530_vm2 = vmpackc.low %vm240_vm1, %vm240_vm1  ;;  %v407_v24 = vpop.permute.xlu1 %406 }
  0x96   : > { %570 = vmatmul.mubr.msk.bf16.vlgmr.msra.gmra.mxu0 %vm530_vm2, %v710_v16  ;;  %vm408_vm4 = vcmp.eq.s32.totalorder %v236_v14, %v407_v24 }
 0x156   : > { %v326_v19 = vpop.f32.mrf.mxu0 }
 0x157   : > { %v332_v20 = vpack.c.bf16 %v326_v19, %v326_v19 }
 0x158   : > { %v571_v21 = vpop.f32.mrf.mxu0 }
 0x159   : > { %580 = vmatmul.mubr.msk.bf16.vlgmr.msra.gmra.mxu1 %vm351_vm3, %v332_v20 }
 0x15a   : > { %v329_v22 = vpop.f32.mrf.mxu0 }
 0x15c   : > { %v572_v23 = vpop.f32.mrf.mxu0 }
 0x219   : > { %v389_v25 = vpop.f32.mrf.mxu1 }
 0x21a   : > { %395 = vmax.xlane.f32.xlu0 %v389_v25  ;;  %v409_v28 = vsel %vm408_vm4, %v389_v25, 0.0 }
 0x21b   : > { %v581_v26 = vpop.f32.mrf.mxu1 }
 0x21d   : > { %v392_v27 = vpop.f32.mrf.mxu1 }
 0x21e   : > { %410 = vadd.xlane.f32.xlu0 %v409_v28 }
 0x21f   : > { %v582_v29 = vpop.f32.mrf.mxu1 }
 0x2a3   : > { %v396_v30 = vpop.xlane.xlu0 %395 }
 0x2a4   : > { %v397_v31 = vsub.f32 %v389_v25, %v396_v30 }
 0x2a6   : > { %v398_v32 = vmul.f32 1.442695, %v397_v31 }
 0x2a7   : > { %v411_v38 = vpop.xlane.xlu0 %410 }
 0x2a8   : > { %641 = vpow2.f32 %v398_v32 }
 0x2b5   : > { %v642_v33 = vpop.eup %641 }
 0x2b6   : > { %400 = vadd.xlane.f32.xlu1 %v642_v33 }
 0x33f   : > { %v401_v34 = vpop.xlane.xlu1 %400 }
 0x340   : > { %643 = vlog2.f32 %v401_v34 }
 0x34d   : > { %v644_v35 = vpop.eup %643 }
 0x34e   : > { %v403_v36 = vmul.f32 0.6931472, %v644_v35 }
 0x350   : > { %v404_v37 = vadd.f32 %v403_v36, %v396_v30 }
 0x352   : > { %v413_v39 = vsub.f32 %v404_v37, %v411_v38 }
 0x354   : > { %v414_v40 = vsel %vm412_vm5, %v413_v39, 0.0 }
 0x355   : > { %v416_v41 = vsel %vm415_vm6, %v414_v40, 0.0 }
 0x356   : > { %417 = vadd.xlane.f32.xlu0 %v416_v41 }
 0x3df   : > { %v418_v42 = vpop.xlane.xlu0 %417 }
 0x3e0   : > { %v419_v43 = vrot.slane %v418_v42, 4 }
 0x3e2   : > { %v420_v44 = vadd.f32 %v419_v43, %v418_v42 }
 0x3e4   : > { %v421_v45 = vrot.slane %v420_v44, 2 }
 0x3e6   : > { %v422_v46 = vadd.f32 %v421_v45, %v420_v44 }
 0x3e8   : > { %v423_v47 = vrot.slane %v422_v46, 1 }
 0x3ea   : > { %v424_v48 = vadd.f32 %v423_v47, %v422_v46 }
 0x3ec   : > { %583 = vpush %v424_v48 }
 0x41d   : > { %s584_s28 = spop %583 }
 0x41e   : > { %v426_v49 = vstv %s584_s28 }
 0x41f   : > { %428 = vst [vmem:[%s201_s22] sm:$0xff] %v426_v49 }
 0x420   : > { %658 = shalt.err (!%p655_p3)
}
 0x421   : > { %s659_s12 = scalar_lea.hbm %s441_s7, 128  ;;  %s663_s20 = scalar_lea.hbm %s877_s4, 256 }
 0x422   : > { %p660_p4 = scmp.ne.s32.totalorder %s441_s7, %s659_s12  ;;  %p664_p9 = scmp.lt.s32.totalorder %s441_s7, %s877_s4 }
 0x423   : > { %p665_p10 = scmp.lt.s32.totalorder %s663_s20, %s659_s12 }
 0x424   : > { %p661_p7 = pnand %p660_p4, %p775_p5 }
 0x425   : > { %p666_p11 = por %p665_p10, %p664_p9 }
 0x426   : > { %p662_p8 = pneg %p661_p7 }
 0x428   : > { %p667_p12 = pnand %p666_p11, %p662_p8 }
 0x42a   : > { %670 = shalt.err (!%p667_p12)
}
 0x42b   : > { %585 = dma.vmem_to_hbm [thread:$0]  (%p775_p5), %s835_s23, 128, %s441_s7, %s430_s8  }
 0x42c PF: > { %p591_p13 = scmp.ge.s32.totalorder %s705_s18, 2  ;;  %s455_s22 = sand.u32 1, %s693_s15  }
 0x42d   : > { %s456_s27 = scalar_lea.sflag [#allocation3], %s455_s22 }
 0x42e   : > { %p588_p0 = pnand %p591_p13, %p779_p6 }
 0x430   : > { %p589_p1 = pneg %p588_p0 }
 0x432   : > { %688 = dma.done.wait (%p589_p1), %s456_s27, 128  }
 0x433   : > { %690 = vsyncadd (%p589_p1), %s456_s27, 4294967168  ;;  %p14_p2 = scmp.ge.s32.totalorder %s762_s21, 4   ;;  %s880_s15 = smov %s697_s16 }
 0x434   : > { %s881_s16 = smov %s701_s17  ;;  %s882_s17 = smov %s773_s24 }
 0x435   : > { %s883_s18 = smov %s762_s21  ;;  %16 = sbr.rel (!%p14_p2) target bundleno = 3 (0x3), region = 74 }
 0x43a   :  { %461 = vsyncpa [#allocation3], 1 }
 0x43b   :  { %463 = vsyncpa [#allocation3 + $0x1], 1 }

</bundles_post_ra>
